<compile_context>
chip_gen: v7x
topology: tpu7x:2x2x1
jax: 0.10.0
libtpu: 0.0.40
codegen_flags: <defaults>
</compile_context>

<pallas_src>
import functools

import jax
import jax.numpy as jnp
from jax.experimental import pallas as pl
from jax.experimental.pallas import tpu as pltpu

_LANE = 128


def _round_up(v, m):
    return ((v + m - 1) // m) * m


def _mlp_kernel(xt_ref, w1_ref, b1_ref, w2_ref, b2_ref,
                w3_ref, b3_ref, w4_ref, b4_ref, o_ref, *, chunk, act_dtype):
    # Weights / biases: resident across grid steps (constant index_maps).
    w1 = w1_ref[...]                               # (H, 2)  f32, VPU layer
    b1 = b1_ref[...]                               # (H, 1)
    b2 = b2_ref[...]                               # (H, 1)
    b3 = b3_ref[...]                               # (H, 1)
    b4 = b4_ref[0, 0]                              # scalar, from SMEM
    w2 = w2_ref[...].astype(act_dtype)             # (H, H)  MXU
    w3 = w3_ref[...].astype(act_dtype)             # (H, H)  MXU
    w4 = w4_ref[...].astype(act_dtype)             # (1, H)  MXU head

    tile_n = o_ref.shape[-1]
    # Static chunk loop over lanes: per-chunk activations stay in vregs
    # instead of materializing full (H, tile_n) intermediates for every op.
    for c in range(tile_n // chunk):
        sl = slice(c * chunk, (c + 1) * chunk)     # static, 128-aligned slice
        a = xt_ref[:, sl]                          # (2, C)  batch on lanes

        # Layer 1 (in_dim = 2): two broadcast FMAs on the VPU.
        z1 = w1[:, 0:1] * a[0:1, :] + w1[:, 1:2] * a[1:2, :] + b1   # (H, C)
        a1 = jnp.tanh(z1.astype(act_dtype))

        # Layers 2 & 3: HxH matmuls on the MXU, f32 accumulation.
        z2 = jnp.dot(w2, a1, preferred_element_type=jnp.float32) + b2
        a2 = jnp.tanh(z2.astype(act_dtype))
        z3 = jnp.dot(w3, a2, preferred_element_type=jnp.float32) + b3
        a3 = jnp.tanh(z3.astype(act_dtype))

        # Layer 4 (single output unit): tiny MXU matmul (frees VALU/XLU).
        z4 = jnp.dot(w4, a3, preferred_element_type=jnp.float32) + b4   # (1, C)

        o_ref[:, sl] = z4                          # lane-dense store


def _choose_tiling(n, max_tile, chunk):
    """Pick (n_pad, tile, chunk, grid).

    Guarantees: tile % chunk == 0, tile/chunk multiples of 128, grid * tile
    == n_pad >= n, and the grid has an even number (>= 2) of steps whenever
    the padded batch exceeds one 128-lane unit (both v7x TCs get work).
    """
    chunk = max(_LANE, (int(chunk) // _LANE) * _LANE)
    max_tile = max(chunk, (int(max_tile) // chunk) * chunk)
    n128 = _round_up(n, _LANE)
    if n128 <= _LANE:                              # single tiny tile
        return n128, n128, n128, 1
    grid = max(2, pl.cdiv(n128, max_tile))         # >= 2 steps for v7x dual-TC
    if grid % 2:
        grid += 1                                  # even steps: no lone tail step
    tile = pl.cdiv(n128 // _LANE, grid) * _LANE    # per-step lanes (mult of 128)
    if tile > chunk:
        tile = _round_up(tile, chunk)              # uniform in-kernel chunks
    else:
        chunk = tile                               # small tile == single chunk
    return grid * tile, tile, chunk, grid


def pinn_forward(x, params, *, max_tile_n=4096, chunk_n=256, use_bf16=False):
    """Forward pass of PINeuralNet.

    x      : (N, 2) array of (t, x) collocation points (any float dtype).
    params : dict with PyTorch-layout weights:
             f1_w (H,2), f1_b (H,), f2_w (H,H), f2_b (H,),
             f3_w (H,H), f3_b (H,), out_w (1,H), out_b (1,)
    returns: (N, 1) float32
    """
    N, in_dim = x.shape
    assert in_dim == 2
    H = params["f1_w"].shape[0]

    n_pad, tile_n, chunk, grid_n = _choose_tiling(N, max_tile_n, chunk_n)

    x = x.astype(jnp.float32)
    if n_pad != N:
        x = jnp.pad(x, ((0, n_pad - N), (0, 0)))
    xt = x.T                                       # (2, n_pad): batch on lanes

    f32 = lambda v: jnp.asarray(v, jnp.float32)
    w1 = f32(params["f1_w"])                       # (H, 2)
    b1 = f32(params["f1_b"]).reshape(H, 1)
    w2 = f32(params["f2_w"])                       # (H, H)
    b2 = f32(params["f2_b"]).reshape(H, 1)
    w3 = f32(params["f3_w"])                       # (H, H)
    b3 = f32(params["f3_b"]).reshape(H, 1)
    w4 = f32(params["out_w"]).reshape(1, H)        # (1, H) row for the MXU head
    b4 = f32(params["out_b"]).reshape(1, 1)        # scalar, lives in SMEM

    full = lambda i: (0, 0)                        # weights/biases are not tiled
    kernel = functools.partial(
        _mlp_kernel, chunk=chunk,
        act_dtype=jnp.bfloat16 if use_bf16 else jnp.float32)

    grid_spec = pltpu.PrefetchScalarGridSpec(
        num_scalar_prefetch=0,
        grid=(grid_n,),
        in_specs=[
            pl.BlockSpec((2, tile_n), lambda i: (0, i)),        # x^T tile
            pl.BlockSpec((H, 2), full),                         # w1
            pl.BlockSpec((H, 1), full),                         # b1
            pl.BlockSpec((H, H), full),                         # w2
            pl.BlockSpec((H, 1), full),                         # b2
            pl.BlockSpec((H, H), full),                         # w3
            pl.BlockSpec((H, 1), full),                         # b3
            pl.BlockSpec((1, H), full),                         # w4 (row)
            pl.BlockSpec(memory_space=pltpu.MemorySpace.SMEM),  # b4 scalar
        ],
        out_specs=pl.BlockSpec((1, tile_n), lambda i: (0, i)),  # lane-dense rows
    )

    out_row = pl.pallas_call(
        kernel,
        out_shape=jax.ShapeDtypeStruct((1, n_pad), jnp.float32),
        grid_spec=grid_spec,
        compiler_params=pltpu.CompilerParams(
            dimension_semantics=("parallel",)),
    )(xt, w1, b1, w2, b2, w3, b3, w4, b4)

    # (1, n_pad) -> (n_pad, 1) is a free row-major relabel; drop padded rows.
    return out_row.reshape(n_pad, 1)[:N]


def init_params(key, neurons):
    """nn.Linear-style init (uniform(-1/sqrt(fan_in), +)), PyTorch (out, in) layout."""
    def linear(k, fan_in, fan_out):
        kw, kb = jax.random.split(k)
        bound = 1.0 / (fan_in ** 0.5)
        w = jax.random.uniform(kw, (fan_out, fan_in), jnp.float32, -bound, bound)
        b = jax.random.uniform(kb, (fan_out,), jnp.float32, -bound, bound)
        return w, b

    k1, k2, k3, k4 = jax.random.split(key, 4)
    f1_w, f1_b = linear(k1, 2, neurons)
    f2_w, f2_b = linear(k2, neurons, neurons)
    f3_w, f3_b = linear(k3, neurons, neurons)
    out_w, out_b = linear(k4, neurons, 1)
    # TODO(synk): e, c1, c2 are nn.Parameters of the module but unused in forward().
    return dict(f1_w=f1_w, f1_b=f1_b, f2_w=f2_w, f2_b=f2_b,
                f3_w=f3_w, f3_b=f3_b, out_w=out_w, out_b=out_b,
                e=jnp.float32(1.0), c1=jnp.float32(0.5), c2=jnp.float32(0.5))


def reference_forward(x, p):
    a = x.astype(jnp.float32)
    a = jnp.tanh(a @ p["f1_w"].T + p["f1_b"])
    a = jnp.tanh(a @ p["f2_w"].T + p["f2_b"])
    a = jnp.tanh(a @ p["f3_w"].T + p["f3_b"])
    return a @ p["out_w"].T + p["out_b"]


if __name__ == "__main__":
    key = jax.random.PRNGKey(0)
    kx, kp = jax.random.split(key)

    neurons = 32
    N = 1000                     # exercises padding, 2-step grid, chunk loop
    x = jax.random.normal(kx, (N, 2), jnp.float32)
    params = init_params(kp, neurons)

    # jit the whole wrapper so the pad/transpose/reshape fuse around the kernel.
    fwd = jax.jit(pinn_forward)
    out = jax.block_until_ready(fwd(x, params))

    ref = reference_forward(x, params)
    assert out.shape == (N, 1)
    assert jnp.allclose(out, ref, atol=1e-4, rtol=1e-4), "mismatch vs reference"

    print("KERNEL_OK")
</pallas_src>

<mosaic_0001>
module attributes {stable_mosaic.version = 11 : i64} {
  func.func @_mlp_kernel(%arg0: i32, %arg1: memref<2x512xf32, #tpu.memory_space<vmem>>, %arg2: memref<32x2xf32, #tpu.memory_space<vmem>>, %arg3: memref<32x1xf32, #tpu.memory_space<vmem>>, %arg4: memref<32x32xf32, #tpu.memory_space<vmem>>, %arg5: memref<32x1xf32, #tpu.memory_space<vmem>>, %arg6: memref<32x32xf32, #tpu.memory_space<vmem>>, %arg7: memref<32x1xf32, #tpu.memory_space<vmem>>, %arg8: memref<1x32xf32, #tpu.memory_space<vmem>>, %arg9: memref<1x1xf32, #tpu.memory_space<smem>>, %arg10: memref<1x512xf32, #tpu.memory_space<vmem>>) attributes {dimension_semantics = [#tpu.dimension_semantics<parallel>], iteration_bounds = array<i64: 2>, scalar_prefetch = 0 : i64, scratch_operands = 0 : i64, tpu.core_type = #tpu.core_type<tc>, window_params = [{transform_indices = @transform_0, window_bounds = array<i64: 2, 512>}, {pipeline_mode = #tpu.pipeline_mode<synchronous>, transform_indices = @transform_1, window_bounds = array<i64: 32, 2>}, {pipeline_mode = #tpu.pipeline_mode<synchronous>, transform_indices = @transform_2, window_bounds = array<i64: 32, 1>}, {pipeline_mode = #tpu.pipeline_mode<synchronous>, transform_indices = @transform_3, window_bounds = array<i64: 32, 32>}, {pipeline_mode = #tpu.pipeline_mode<synchronous>, transform_indices = @transform_4, window_bounds = array<i64: 32, 1>}, {pipeline_mode = #tpu.pipeline_mode<synchronous>, transform_indices = @transform_5, window_bounds = array<i64: 32, 32>}, {pipeline_mode = #tpu.pipeline_mode<synchronous>, transform_indices = @transform_6, window_bounds = array<i64: 32, 1>}, {pipeline_mode = #tpu.pipeline_mode<synchronous>, transform_indices = @transform_7, window_bounds = array<i64: 1, 32>}, {transform_indices = @transform_8, window_bounds = array<i64: 1, 1>}, {transform_indices = @transform_9, window_bounds = array<i64: 1, 512>}]} {
    %c0 = arith.constant 0 : index
    %c0_0 = arith.constant 0 : index
    %0 = vector.load %arg2[%c0, %c0_0] : memref<32x2xf32, #tpu.memory_space<vmem>>, vector<32x2xf32>
    %c0_1 = arith.constant 0 : index
    %c0_2 = arith.constant 0 : index
    %1 = vector.load %arg3[%c0_1, %c0_2] : memref<32x1xf32, #tpu.memory_space<vmem>>, vector<32x1xf32>
    %c0_3 = arith.constant 0 : index
    %c0_4 = arith.constant 0 : index
    %2 = vector.load %arg5[%c0_3, %c0_4] : memref<32x1xf32, #tpu.memory_space<vmem>>, vector<32x1xf32>
    %c0_5 = arith.constant 0 : index
    %c0_6 = arith.constant 0 : index
    %3 = vector.load %arg7[%c0_5, %c0_6] : memref<32x1xf32, #tpu.memory_space<vmem>>, vector<32x1xf32>
    %c0_7 = arith.constant 0 : index
    %c0_8 = arith.constant 0 : index
    %4 = memref.load %arg9[%c0_7, %c0_8] : memref<1x1xf32, #tpu.memory_space<smem>>
    %c0_9 = arith.constant 0 : index
    %c0_10 = arith.constant 0 : index
    %5 = vector.load %arg4[%c0_9, %c0_10] : memref<32x32xf32, #tpu.memory_space<vmem>>, vector<32x32xf32>
    %c0_11 = arith.constant 0 : index
    %c0_12 = arith.constant 0 : index
    %6 = vector.load %arg6[%c0_11, %c0_12] : memref<32x32xf32, #tpu.memory_space<vmem>>, vector<32x32xf32>
    %c0_13 = arith.constant 0 : index
    %c0_14 = arith.constant 0 : index
    %7 = vector.load %arg8[%c0_13, %c0_14] : memref<1x32xf32, #tpu.memory_space<vmem>>, vector<1x32xf32>
    %c0_15 = arith.constant 0 : index
    %c0_16 = arith.constant 0 : index
    %8 = vector.load %arg1[%c0_15, %c0_16] : memref<2x512xf32, #tpu.memory_space<vmem>>, vector<2x256xf32>
    %9 = vector.extract_strided_slice %0 {offsets = [0, 0], sizes = [32, 1], strides = [1, 1]} : vector<32x2xf32> to vector<32x1xf32>
    %10 = vector.extract_strided_slice %8 {offsets = [0, 0], sizes = [1, 256], strides = [1, 1]} : vector<2x256xf32> to vector<1x256xf32>
    %11 = vector.broadcast %9 : vector<32x1xf32> to vector<32x256xf32>
    %12 = vector.broadcast %10 : vector<1x256xf32> to vector<32x256xf32>
    %13 = arith.mulf %11, %12 : vector<32x256xf32>
    %14 = vector.extract_strided_slice %0 {offsets = [0, 1], sizes = [32, 1], strides = [1, 1]} : vector<32x2xf32> to vector<32x1xf32>
    %15 = vector.extract_strided_slice %8 {offsets = [1, 0], sizes = [1, 256], strides = [1, 1]} : vector<2x256xf32> to vector<1x256xf32>
    %16 = vector.broadcast %14 : vector<32x1xf32> to vector<32x256xf32>
    %17 = vector.broadcast %15 : vector<1x256xf32> to vector<32x256xf32>
    %18 = arith.mulf %16, %17 : vector<32x256xf32>
    %19 = arith.addf %13, %18 : vector<32x256xf32>
    %20 = vector.broadcast %1 : vector<32x1xf32> to vector<32x256xf32>
    %21 = arith.addf %19, %20 : vector<32x256xf32>
    %22 = math.tanh %21 : vector<32x256xf32>
    %cst = arith.constant dense<0.000000e+00> : vector<32x256xf32>
    %23 = tpu.matmul %5, %22, %cst {dimension_numbers = #tpu.dot_dimension_numbers<[1], [0], [0], [1], [0, 0, 1, 1], [], []>} : vector<32x32xf32>, vector<32x256xf32>, vector<32x256xf32> -> vector<32x256xf32>
    %24 = vector.broadcast %2 : vector<32x1xf32> to vector<32x256xf32>
    %25 = arith.addf %23, %24 : vector<32x256xf32>
    %26 = math.tanh %25 : vector<32x256xf32>
    %cst_17 = arith.constant dense<0.000000e+00> : vector<32x256xf32>
    %27 = tpu.matmul %6, %26, %cst_17 {dimension_numbers = #tpu.dot_dimension_numbers<[1], [0], [0], [1], [0, 0, 1, 1], [], []>} : vector<32x32xf32>, vector<32x256xf32>, vector<32x256xf32> -> vector<32x256xf32>
    %28 = vector.broadcast %3 : vector<32x1xf32> to vector<32x256xf32>
    %29 = arith.addf %27, %28 : vector<32x256xf32>
    %30 = math.tanh %29 : vector<32x256xf32>
    %cst_18 = arith.constant dense<0.000000e+00> : vector<1x256xf32>
    %31 = tpu.matmul %7, %30, %cst_18 {dimension_numbers = #tpu.dot_dimension_numbers<[1], [0], [0], [1], [0, 0, 1, 1], [], []>} : vector<1x32xf32>, vector<32x256xf32>, vector<1x256xf32> -> vector<1x256xf32>
    %32 = vector.broadcast %4 : f32 to vector<1x256xf32>
    %33 = arith.addf %31, %32 : vector<1x256xf32>
    %c0_19 = arith.constant 0 : index
    %c0_20 = arith.constant 0 : index
    %34 = vector.load %arg10[%c0_19, %c0_20] : memref<1x512xf32, #tpu.memory_space<vmem>>, vector<1x256xf32>
    tpu.vector_store %arg10[%c0_19, %c0_20], %33 {strides = array<i32>} : memref<1x512xf32, #tpu.memory_space<vmem>>, vector<1x256xf32>,
    %c0_21 = arith.constant 0 : index
    %c256 = arith.constant 256 : index
    %35 = vector.load %arg1[%c0_21, %c256] : memref<2x512xf32, #tpu.memory_space<vmem>>, vector<2x256xf32>
    %36 = vector.extract_strided_slice %0 {offsets = [0, 0], sizes = [32, 1], strides = [1, 1]} : vector<32x2xf32> to vector<32x1xf32>
    %37 = vector.extract_strided_slice %35 {offsets = [0, 0], sizes = [1, 256], strides = [1, 1]} : vector<2x256xf32> to vector<1x256xf32>
    %38 = vector.broadcast %36 : vector<32x1xf32> to vector<32x256xf32>
    %39 = vector.broadcast %37 : vector<1x256xf32> to vector<32x256xf32>
    %40 = arith.mulf %38, %39 : vector<32x256xf32>
    %41 = vector.extract_strided_slice %0 {offsets = [0, 1], sizes = [32, 1], strides = [1, 1]} : vector<32x2xf32> to vector<32x1xf32>
    %42 = vector.extract_strided_slice %35 {offsets = [1, 0], sizes = [1, 256], strides = [1, 1]} : vector<2x256xf32> to vector<1x256xf32>
    %43 = vector.broadcast %41 : vector<32x1xf32> to vector<32x256xf32>
    %44 = vector.broadcast %42 : vector<1x256xf32> to vector<32x256xf32>
    %45 = arith.mulf %43, %44 : vector<32x256xf32>
    %46 = arith.addf %40, %45 : vector<32x256xf32>
    %47 = vector.broadcast %1 : vector<32x1xf32> to vector<32x256xf32>
    %48 = arith.addf %46, %47 : vector<32x256xf32>
    %49 = math.tanh %48 : vector<32x256xf32>
    %cst_22 = arith.constant dense<0.000000e+00> : vector<32x256xf32>
    %50 = tpu.matmul %5, %49, %cst_22 {dimension_numbers = #tpu.dot_dimension_numbers<[1], [0], [0], [1], [0, 0, 1, 1], [], []>} : vector<32x32xf32>, vector<32x256xf32>, vector<32x256xf32> -> vector<32x256xf32>
    %51 = vector.broadcast %2 : vector<32x1xf32> to vector<32x256xf32>
    %52 = arith.addf %50, %51 : vector<32x256xf32>
    %53 = math.tanh %52 : vector<32x256xf32>
    %cst_23 = arith.constant dense<0.000000e+00> : vector<32x256xf32>
    %54 = tpu.matmul %6, %53, %cst_23 {dimension_numbers = #tpu.dot_dimension_numbers<[1], [0], [0], [1], [0, 0, 1, 1], [], []>} : vector<32x32xf32>, vector<32x256xf32>, vector<32x256xf32> -> vector<32x256xf32>
    %55 = vector.broadcast %3 : vector<32x1xf32> to vector<32x256xf32>
    %56 = arith.addf %54, %55 : vector<32x256xf32>
    %57 = math.tanh %56 : vector<32x256xf32>
    %cst_24 = arith.constant dense<0.000000e+00> : vector<1x256xf32>
    %58 = tpu.matmul %7, %57, %cst_24 {dimension_numbers = #tpu.dot_dimension_numbers<[1], [0], [0], [1], [0, 0, 1, 1], [], []>} : vector<1x32xf32>, vector<32x256xf32>, vector<1x256xf32> -> vector<1x256xf32>
    %59 = vector.broadcast %4 : f32 to vector<1x256xf32>
    %60 = arith.addf %58, %59 : vector<1x256xf32>
    %c0_25 = arith.constant 0 : index
    %c256_26 = arith.constant 256 : index
    %61 = vector.load %arg10[%c0_25, %c256_26] : memref<1x512xf32, #tpu.memory_space<vmem>>, vector<1x256xf32>
    tpu.vector_store %arg10[%c0_25, %c256_26], %60 {strides = array<i32>} : memref<1x512xf32, #tpu.memory_space<vmem>>, vector<1x256xf32>,
    return
  }
  func.func @transform_0(%arg0: i32) -> (i32, i32) {
    %c0_i32 = arith.constant 0 : i32
    %c0_i32_0 = arith.constant 0 : i32
    return %c0_i32, %arg0 : i32, i32
  }
  func.func @transform_1(%arg0: i32) -> (i32, i32) {
    %c0_i32 = arith.constant 0 : i32
    %c0_i32_0 = arith.constant 0 : i32
    %c0_i32_1 = arith.constant 0 : i32
    return %c0_i32, %c0_i32_0 : i32, i32
  }
  func.func @transform_2(%arg0: i32) -> (i32, i32) {
    %c0_i32 = arith.constant 0 : i32
    %c0_i32_0 = arith.constant 0 : i32
    %c0_i32_1 = arith.constant 0 : i32
    return %c0_i32, %c0_i32_0 : i32, i32
  }
  func.func @transform_3(%arg0: i32) -> (i32, i32) {
    %c0_i32 = arith.constant 0 : i32
    %c0_i32_0 = arith.constant 0 : i32
    %c0_i32_1 = arith.constant 0 : i32
    return %c0_i32, %c0_i32_0 : i32, i32
  }
  func.func @transform_4(%arg0: i32) -> (i32, i32) {
    %c0_i32 = arith.constant 0 : i32
    %c0_i32_0 = arith.constant 0 : i32
    %c0_i32_1 = arith.constant 0 : i32
    return %c0_i32, %c0_i32_0 : i32, i32
  }
  func.func @transform_5(%arg0: i32) -> (i32, i32) {
    %c0_i32 = arith.constant 0 : i32
    %c0_i32_0 = arith.constant 0 : i32
    %c0_i32_1 = arith.constant 0 : i32
    return %c0_i32, %c0_i32_0 : i32, i32
  }
  func.func @transform_6(%arg0: i32) -> (i32, i32) {
    %c0_i32 = arith.constant 0 : i32
    %c0_i32_0 = arith.constant 0 : i32
    %c0_i32_1 = arith.constant 0 : i32
    return %c0_i32, %c0_i32_0 : i32, i32
  }
  func.func @transform_7(%arg0: i32) -> (i32, i32) {
    %c0_i32 = arith.constant 0 : i32
    %c0_i32_0 = arith.constant 0 : i32
    %c0_i32_1 = arith.constant 0 : i32
    return %c0_i32, %c0_i32_0 : i32, i32
  }
  func.func @transform_8(%arg0: i32) -> (i32, i32) {
    %c0_i32 = arith.constant 0 : i32
    %c0_i32_0 = arith.constant 0 : i32
    %c0_i32_1 = arith.constant 0 : i32
    return %c0_i32, %c0_i32_0 : i32, i32
  }
  func.func @transform_9(%arg0: i32) -> (i32, i32) {
    %c0_i32 = arith.constant 0 : i32
    %c0_i32_0 = arith.constant 0 : i32
    return %c0_i32, %arg0 : i32, i32
  }
}

</mosaic_0001>

<bundles_post_ra>
// kernel: pinn_forward.1
= control target key start
LH: loop header
LB: loop body
LE: loop exit
PB: predicated region body
PF: predicated region fallthrough
CT: control target
= control target key end

     0   :  { %s1519_s11 = smov 0   ;;  %s1850_s0 = inlined_call_operand.vmem [shape: f32[2,1024], index: 0, kind: input, shape index: {}]   ;;  %s1851_s1 = inlined_call_operand.vmem [shape: f32[32,2], index: 1, kind: input, shape index: {}]   ;;  %s1852_s2 = inlined_call_operand.vmem [shape: f32[32,1], index: 2, kind: input, shape index: {}]   ;;  %s1853_s3 = inlined_call_operand.vmem [shape: f32[32,32], index: 3, kind: input, shape index: {}]   ;;  %s1854_s4 = inlined_call_operand.vmem [shape: f32[32,1], index: 4, kind: input, shape index: {}]   ;;  %s1855_s5 = inlined_call_operand.vmem [shape: f32[32,32], index: 5, kind: input, shape index: {}]   ;;  %s1856_s6 = inlined_call_operand.vmem [shape: f32[32,1], index: 6, kind: input, shape index: {}]   ;;  %s1857_s7 = inlined_call_operand.vmem [shape: f32[1,32], index: 7, kind: input, shape index: {}]   ;;  %s1858_s8 = inlined_call_operand.<no memory space> [shape: f32[1,1], index: 8, kind: input, shape index: {}]   ;;  %s1859_s9 = inlined_call_operand.vmem [shape: f32[1,1024], index: 9, kind: output, shape index: {}]  }
   0x1   :  { %14 = sst [smem:[#allocation2]] %s1858_s8 }
   0x2 LB: > { %s1264_s12 = sadd.s32 4294967295, %s1460_s11   ;;  %p1268_p0 = scmp.ge.s32.totalorder %s1460_s11, 1  ;;  %s1460_s11 = sphi %s1519_s11, %s20_s11  }
   0x3   : > { %p289_p1 = scmp.lt.s32.totalorder %s1460_s11, 3 }
   0x5   : > { %p290_p2 = pnand %p1268_p0, %p289_p1 }
   0x6   : > { %v337_v0 = vld [vmem:[%s1851_s1 + $0x10] sm:$0xff] (!%p290_p2)  ;;  %v335_v1 = vld [vmem:[%s1851_s1] sm:$0xff] (!%p290_p2)  ;;  %v383_v2 = vlaneseq (!%p290_p2)  ;;  %s1269_s16 = sshll.u32 (!%p290_p2), %s1264_s12, 2  ;;  %v1462_v3 = vmov (!%p290_p2), 1   ;;  %v336_v5 = vld [vmem:[%s1851_s1 + $0x8] sm:$0xff] (!%p290_p2)  ;;  %v1463_v10 = vmov (!%p290_p2), 0  }
   0x7   : > { %293 = sbr.rel (%p290_p2) target bundleno = 1155 (0x483), region = 56  ;;  %1354 = vset.pattern.permute.xlu0 (!%p290_p2), %v1462_v3  ;;  %1352 = vset.pattern.permute.xlu1 (!%p290_p2), %v1462_v3  ;;  %p325_p3 = scmp.lt.s32.totalorder (!%p290_p2), %s1269_s16, 7  ;;  %v338_v12 = vld [vmem:[%s1851_s1 + $0x18] sm:$0xff] (!%p290_p2)  ;;  %v340_v21 = vld [vmem:[%s1852_s2 + $0x8] sm:$0xff] (!%p290_p2)  ;;  %v339_v22 = vld [vmem:[%s1852_s2] sm:$0xff] (!%p290_p2)  ;;  %v1464_v33 = vmov (!%p290_p2), 0.0  }
   0x8   : > { %418 = vperm.xlu0 (!%p290_p2), %1354, %v337_v0   ;;  %410 = vperm.xlu1 (!%p290_p2), %1352, %v335_v1   ;;  %v1534_v4 = vshrl.u32 (!%p290_p2), %v383_v2, 7  ;;  %v343_v23 = vld [vmem:[%s1854_s4] sm:$0xff] (!%p290_p2)  ;;  %v341_v24 = vld [vmem:[%s1852_s2 + $0x10] sm:$0xff] (!%p290_p2)  ;;  %v342_v26 = vld [vmem:[%s1852_s2 + $0x18] sm:$0xff] (!%p290_p2)  ;;  %vm515_vm0 = vcmask (!%p290_p2), 261120   ;;  %s351_s28 = sld [smem:[#allocation2]] (!%p290_p2) }
   0x9   : > { %v345_v25 = vld [vmem:[%s1854_s4 + $0x10] sm:$0xff] (!%p290_p2)  ;;  %v347_v27 = vld [vmem:[%s1856_s6] sm:$0xff] (!%p290_p2)  ;;  %v344_v28 = vld [vmem:[%s1854_s4 + $0x8] sm:$0xff] (!%p290_p2)  ;;  %592 = vmatprep.mubr.f32.mxu0 (!%p290_p2), %v1464_v33  ;;  %721 = vmatprep.mubr.f32.mxu1 (!%p290_p2), %v1464_v33  ;;  %vm1827_vm1 = vcmp.lt.s32.totalorder (!%p290_p2), %v383_v2, 256 }
   0xa   : > { %v1542_v6 = vsub.s32 (!%p290_p2), 1, %v1534_v4  ;;  %v431_v7 = vsub.s32 (!%p290_p2), 3, %v1534_v4  ;;  %v1547_v8 = vsub.s32 (!%p290_p2), 0, %v1534_v4  ;;  %v389_v9 = vsub.s32 (!%p290_p2), 2, %v1534_v4  ;;  %v349_v29 = vld [vmem:[%s1856_s6 + $0x10] sm:$0xff] (!%p290_p2)  ;;  %v346_v30 = vld [vmem:[%s1854_s4 + $0x18] sm:$0xff] (!%p290_p2) }
   0xb   : > { %v348_v31 = vld [vmem:[%s1856_s6 + $0x8] sm:$0xff] (!%p290_p2)  ;;  %v350_v32 = vld [vmem:[%s1856_s6 + $0x18] sm:$0xff] (!%p290_p2) }
   0xc   : > { %1355 = vset.pattern.permute.xlu0 (!%p290_p2), %v1463_v10  ;;  %414 = vperm.xlu1 (!%p290_p2), %1352, %v336_v5  }
   0xd   : > { %364 = vperm.xlu0 (!%p290_p2), %1355, %v335_v1  }
   0xe   : > { %s1863_s16 = smov (!%p325_p3, %s1269_s16), 7 }
   0xf   : > { %s1270_s19 = sshll.u32 %s1863_s16, 1  ;;  %s1824_s30 = scalar_lea.vmem %s1859_s9, %s1863_s16 }
  0x10   : > { %s1553_s22 = scalar_lea.vmem %s1850_s0, %s1270_s19  ;;  %1353 = vset.pattern.permute.xlu1 %v1463_v10 }
  0x11   : > { %v852_v11 = vld [vmem:[%s1553_s22 + $0x4] sm:$0xf]  ;;  %369 = vperm.xlu0 %1355, %v336_v5   ;;  %379 = vperm.xlu1 %1353, %v338_v12   ;;  %v361_v38 = vld [vmem:[%s1553_s22] sm:$0xf] }
  0x12   : > { %v883_v13 = vrot.slane %v852_v11, %v1542_v6  ;;  %v887_v14 = vrot.slane %v852_v11, %v431_v7  ;;  %v857_v15 = vrot.slane %v852_v11, %v1547_v8  ;;  %v861_v16 = vrot.slane %v852_v11, %v389_v9 }
  0x13   : > { %v428_v42 = vrot.slane %v361_v38, %v1542_v6  ;;  %v386_v46 = vrot.slane %v361_v38, %v1547_v8  ;;  %v390_v47 = vrot.slane %v361_v38, %v389_v9  ;;  %v432_v50 = vrot.slane %v361_v38, %v431_v7 }
  0x14   : > { %v1566_v17 = vrot.slane %v883_v13, %v1542_v6  ;;  %v1569_v18 = vrot.slane %v887_v14, %v1542_v6  ;;  %v1572_v19 = vrot.slane %v857_v15, %v1547_v8  ;;  %v1575_v20 = vrot.slane %v861_v16, %v1547_v8 }
  0x15   : > { %374 = vperm.xlu0 %1355, %v337_v0   ;;  %1356 = vset.pattern.permute.xlu1 %v1462_v3  ;;  %v438_v53 = vrot.slane %v428_v42, %v1542_v6  ;;  %v396_v54 = vrot.slane %v386_v46, %v1547_v8  ;;  %v400_v57 = vrot.slane %v390_v47, %v1547_v8 }
  0x16   : > { %422 = vperm.xlu1 %1356, %v338_v12   ;;  %v442_v60 = vrot.slane %v432_v50, %v1542_v6 }
  0x19   : > { %466 = vperm.xlu0 %1355, %v340_v21  }
  0x1a   : > { %1357 = vset.pattern.permute.xlu1 %v1463_v10 }
  0x1b   : > { %461 = vperm.xlu1 %1357, %v339_v22  }
  0x1d   : > { %497 = vperm.xlu0 %1355, %v343_v23  }
  0x1f   : > { %471 = vperm.xlu1 %1357, %v341_v24  }
  0x21   : > { %507 = vperm.xlu0 %1355, %v345_v25  }
  0x23   : > { %476 = vperm.xlu1 %1357, %v342_v26  }
  0x25   : > { %627 = vperm.xlu0 %1355, %v347_v27  }
  0x27   : > { %502 = vperm.xlu1 %1357, %v344_v28  }
  0x29   : > { %637 = vperm.xlu0 %1355, %v349_v29  }
  0x2b   : > { %512 = vperm.xlu1 %1357, %v346_v30  }
  0x2f   : > { %632 = vperm.xlu1 %1357, %v348_v31  }
  0x33   : > { %642 = vperm.xlu1 %1357, %v350_v32  }
  0x87   : > { %v411_v34 = vpop.permute.xlu1 %410  ;;  %v1615_v35 = vpop.permute.xlu0 %418 }
  0x88   : > { %v898_v36 = vmul.f32 %v1566_v17, %v411_v34  ;;  %v899_v37 = vmul.f32 %v1569_v18, %v411_v34  ;;  %v902_v39 = vmul.f32 %v1566_v17, %v1615_v35  ;;  %v903_v40 = vmul.f32 %v1569_v18, %v1615_v35 }
  0x89   : > { %v443_v5 = vmul.f32 %v438_v53, %v411_v34  ;;  %v444_v14 = vmul.f32 %v442_v60, %v411_v34  ;;  %v448_v38 = vmul.f32 %v442_v60, %v1615_v35 }
  0x8b   : > { %v415_v41 = vpop.permute.xlu1 %414 }
  0x8c   : > { %v900_v43 = vmul.f32 %v1566_v17, %v415_v41  ;;  %v901_v44 = vmul.f32 %v1569_v18, %v415_v41  ;;  %v365_v45 = vpop.permute.xlu0 %364  ;;  %v445_v10 = vmul.f32 %v438_v53, %v415_v41  ;;  %v446_v11 = vmul.f32 %v442_v60, %v415_v41 }
  0x8d   : > { %v872_v48 = vmul.f32 %v1572_v19, %v365_v45  ;;  %v873_v49 = vmul.f32 %v1575_v20, %v365_v45  ;;  %v401_v7 = vmul.f32 %v396_v54, %v365_v45  ;;  %v402_v6 = vmul.f32 %v400_v57, %v365_v45 }
  0x8f   : > { %v906_v51 = vadd.f32 %v898_v36, %v872_v48  ;;  %v907_v52 = vadd.f32 %v899_v37, %v873_v49  ;;  %v451_v27 = vadd.f32 %v443_v5, %v401_v7  ;;  %v452_v36 = vadd.f32 %v444_v14, %v402_v6 }
  0x90   : > { %v370_v55 = vpop.permute.xlu0 %369  ;;  %v380_v56 = vpop.permute.xlu1 %379 }
  0x91   : > { %v874_v58 = vmul.f32 %v1572_v19, %v370_v55  ;;  %v875_v59 = vmul.f32 %v1575_v20, %v370_v55  ;;  %v878_v61 = vmul.f32 %v1572_v19, %v380_v56  ;;  %v879_v62 = vmul.f32 %v1575_v20, %v380_v56 }
  0x92   : > { %v403_v63 = vmul.f32 %v396_v54, %v370_v55  ;;  %v404_v0 = vmul.f32 %v400_v57, %v370_v55  ;;  %v407_v46 = vmul.f32 %v396_v54, %v380_v56  ;;  %v408_v49 = vmul.f32 %v400_v57, %v380_v56 }
  0x93   : > { %v908_v1 = vadd.f32 %v900_v43, %v874_v58  ;;  %v909_v3 = vadd.f32 %v901_v44, %v875_v59 }
  0x94   : > { %v375_v9 = vpop.permute.xlu0 %374  ;;  %v453_v21 = vadd.f32 %v445_v10, %v403_v63  ;;  %v454_v22 = vadd.f32 %v446_v11, %v404_v0 }
  0x95   : > { %v876_v8 = vmul.f32 %v1572_v19, %v375_v9  ;;  %v877_v12 = vmul.f32 %v1575_v20, %v375_v9  ;;  %v423_v13 = vpop.permute.xlu1 %422  ;;  %v405_v25 = vmul.f32 %v396_v54, %v375_v9  ;;  %v406_v32 = vmul.f32 %v400_v57, %v375_v9 }
  0x96   : > { %v904_v15 = vmul.f32 %v1566_v17, %v423_v13  ;;  %v905_v16 = vmul.f32 %v1569_v18, %v423_v13  ;;  %v447_v17 = vmul.f32 %v438_v53, %v1615_v35  ;;  %v449_v41 = vmul.f32 %v438_v53, %v423_v13 }
  0x97   : > { %v910_v23 = vadd.f32 %v902_v39, %v876_v8  ;;  %v911_v24 = vadd.f32 %v903_v40, %v877_v12  ;;  %v450_v43 = vmul.f32 %v442_v60, %v423_v13  ;;  %v456_v45 = vadd.f32 %v448_v38, %v406_v32 }
  0x98   : > { %v467_v26 = vpop.permute.xlu0 %466  ;;  %v912_v28 = vadd.f32 %v904_v15, %v878_v61  ;;  %v913_v29 = vadd.f32 %v905_v16, %v879_v62  ;;  %v455_v42 = vadd.f32 %v447_v17, %v405_v25  ;;  %v457_v35 = vadd.f32 %v449_v41, %v407_v46  ;;  %v1683_v25 = vld [vmem:[%s1853_s3 + $0x8] sm:$0xff] }
  0x99   : > { %v481_v30 = vadd.f32 %v467_v26, %v453_v21  ;;  %v482_v19 = vadd.f32 %v467_v26, %v454_v22  ;;  %v916_v31 = vadd.f32 %v908_v1, %v467_v26  ;;  %v917_v20 = vadd.f32 %v909_v3, %v467_v26  ;;  %v1691_v26 = vld [vmem:[%s1853_s3 + $0x10] sm:$0xff] }
  0x9a   : > { %v462_v34 = vpop.permute.xlu1 %461 }
  0x9b   : > { %1358 = vtanh.f32 %v481_v30  ;;  %v479_v18 = vadd.f32 %v462_v34, %v451_v27  ;;  %v914_v37 = vadd.f32 %v906_v51, %v462_v34  ;;  %v480_v39 = vadd.f32 %v462_v34, %v452_v36  ;;  %v1699_v27 = vld [vmem:[%s1853_s3 + $0x18] sm:$0xff] }
  0x9c   : > { %1360 = vtanh.f32 %v482_v19  ;;  %v915_v40 = vadd.f32 %v907_v52, %v462_v34  ;;  %v458_v52 = vadd.f32 %v450_v43, %v408_v49 }
  0x9d   : > { %1362 = vtanh.f32 %v916_v31 }
  0x9e   : > { %1364 = vtanh.f32 %v917_v20  ;;  %v472_v44 = vpop.permute.xlu1 %471 }
  0x9f   : > { %1366 = vtanh.f32 %v479_v18  ;;  %v483_v47 = vadd.f32 %v472_v44, %v455_v42  ;;  %v918_v48 = vadd.f32 %v910_v23, %v472_v44  ;;  %v484_v50 = vadd.f32 %v472_v44, %v456_v45 }
  0xa0   : > { %1368 = vtanh.f32 %v480_v39  ;;  %v919_v51 = vadd.f32 %v911_v24, %v472_v44  ;;  %v1675_v24 = vld [vmem:[%s1853_s3] sm:$0xff] }
  0xa1   : > { %1370 = vtanh.f32 %v914_v37 }
  0xa2   : > { %1372 = vtanh.f32 %v915_v40  ;;  %v477_v55 = vpop.permute.xlu1 %476 }
  0xa3   : > { %1374 = vtanh.f32 %v483_v47  ;;  %v485_v53 = vadd.f32 %v477_v55, %v457_v35  ;;  %v920_v58 = vadd.f32 %v912_v28, %v477_v55  ;;  %v486_v59 = vadd.f32 %v477_v55, %v458_v52  ;;  %v1704_v28 = vpop.permute.xlu0 %497 }
  0xa4   : > { %1376 = vtanh.f32 %v484_v50  ;;  %v921_v60 = vadd.f32 %v913_v29, %v477_v55 }
  0xa5   : > { %v1359_v61 = vpop.eup %1358  ;;  %1378 = vtanh.f32 %v918_v48 }
  0xa6   : > { %v1361_v54 = vpop.eup %1360  ;;  %1380 = vtanh.f32 %v919_v51  ;;  %v1708_v20 = vpop.permute.xlu1 %502 }
  0xa7   : > { %v1648_v62 = vpop.eup %1362  ;;  %1382 = vtanh.f32 %v485_v53  ;;  %v1712_v18 = vpop.permute.xlu0 %507 }
  0xa8   : > { %v1650_v56 = vpop.eup %1364  ;;  %1384 = vtanh.f32 %v486_v59 }
  0xa9   : > { %v1367_v57 = vpop.eup %1366  ;;  %1386 = vtanh.f32 %v920_v58 }
  0xaa   : > { %v1369_v63 = vpop.eup %1368  ;;  %1388 = vtanh.f32 %v921_v60  ;;  %v1294_v0 = vpack.c.bf16 %v1359_v61, %v1367_v57  ;;  %v1716_v41 = vpop.permute.xlu1 %512  ;;  %v1723_v60 = vld [vmem:[%s1855_s5] sm:$0xff]  ;;  %v1737_v61 = vld [vmem:[%s1855_s5 + $0x8] sm:$0xff] }
  0xab   : > { %v1652_v1 = vpop.eup %1370  ;;  %v1292_v3 = vpack.c.bf16 %v1361_v54, %v1369_v63  ;;  %v1751_v54 = vld [vmem:[%s1855_s5 + $0x10] sm:$0xff] }
  0xac   : > { %v1654_v5 = vpop.eup %1372  ;;  %v1318_v7 = vpack.c.bf16 %v1648_v62, %v1652_v1  ;;  %v1759_v62 = vld [vmem:[%s1855_s5 + $0x18] sm:$0xff] }
  0xad   : > { %v1375_v9 = vpop.eup %1374  ;;  %1293 = vmatprep.subr.bf16.mxu0 %v1292_v3  ;;  %v1316_v10 = vpack.c.bf16 %v1650_v56, %v1654_v5  ;;  %v1776_v56 = vpop.permute.xlu0 %627 }
  0xae   : > { %v1377_v11 = vpop.eup %1376  ;;  %1295 = vmatpush1.bf16.msra.mxu0 %v1294_v0  ;;  %v1780_v3 = vpop.permute.xlu1 %632 }
  0xaf   : > { %v1660_v8 = vpop.eup %1378 }
  0xb0   : > { %v1662_v12 = vpop.eup %1380 }
  0xb1   : > { %v1383_v13 = vpop.eup %1382 }
  0xb2   : > { %v1385_v14 = vpop.eup %1384  ;;  %v1298_v6 = vpack.c.bf16 %v1383_v13, %v1375_v9 }
  0xb3   : > { %v1664_v15 = vpop.eup %1386  ;;  %v1296_v16 = vpack.c.bf16 %v1385_v14, %v1377_v11  ;;  %v1784_v11 = vpop.permute.xlu0 %637 }
  0xb4   : > { %v1666_v21 = vpop.eup %1388  ;;  %v1322_v22 = vpack.c.bf16 %v1664_v15, %v1660_v8 }
  0xb5   : > { %1297 = vmatprep.subr.bf16.mxu0 %v1296_v16  ;;  %v1320_v23 = vpack.c.bf16 %v1666_v21, %v1662_v12 }
  0xb6   : > { %1299 = vmatpush1.bf16.msra.mxu0 %v1298_v6  ;;  %v1788_v6 = vpop.permute.xlu1 %642 }
  0xb9   : > { %1272 = vmatmul.mubr.msk.f32.vlgmr.msra.gmra.mrb[0].mxu0 %vm515_vm0, %v1675_v24 }
  0xba   : > { %598 = vmatprep.mubr.f32.mxu0 %v1464_v33 }
  0xbd   : > { %1273 = vmatmul.mubr.msk.f32.gmra.mrb[2].mxu0 %vm515_vm0, %v1683_v25 }
  0xbe   : > { %604 = vmatprep.mubr.f32.mxu0 %v1464_v33 }
  0xc1   : > { %1274 = vmatmul.mubr.msk.f32.gmra.mrb[4].mxu0 %vm515_vm0, %v1691_v26 }
  0xc2   : > { %610 = vmatprep.mubr.f32.mxu0 %v1464_v33 }
  0xc5   : > { %1275 = vmatmul.mubr.msk.f32.gmra.mrb[6].mxu0 %vm515_vm0, %v1699_v27 }
  0xc6   : > { %822 = vmatprep.mubr.f32.mxu0 %v1464_v33 }
 0x18c   : > { %v594_v29 = vpop.f32.mrb[0].mxu0 }
 0x18d   : > { %v595_v30 = vadd.f32 %v594_v29, %v1704_v28  ;;  %v596_v19 = vpop.f32.mrb[1].mxu0 }
 0x18e   : > { %v597_v31 = vadd.f32 %v596_v19, %v1704_v28 }
 0x18f   : > { %1390 = vtanh.f32 %v595_v30 }
 0x190   : > { %v600_v32 = vpop.f32.mrb[2].mxu0  ;;  %1392 = vtanh.f32 %v597_v31 }
 0x191   : > { %v601_v34 = vadd.f32 %v600_v32, %v1708_v20  ;;  %v602_v36 = vpop.f32.mrb[3].mxu0 }
 0x192   : > { %v603_v17 = vadd.f32 %v602_v36, %v1708_v20 }
 0x193   : > { %1394 = vtanh.f32 %v601_v34 }
 0x194   : > { %1396 = vtanh.f32 %v603_v17  ;;  %v606_v37 = vpop.f32.mrb[4].mxu0 }
 0x195   : > { %v607_v38 = vadd.f32 %v606_v37, %v1712_v18  ;;  %v608_v39 = vpop.f32.mrb[5].mxu0 }
 0x196   : > { %v609_v40 = vadd.f32 %v608_v39, %v1712_v18 }
 0x197   : > { %1398 = vtanh.f32 %v607_v38 }
 0x198   : > { %v612_v42 = vpop.f32.mrb[6].mxu0  ;;  %1400 = vtanh.f32 %v609_v40 }
 0x199   : > { %v613_v43 = vadd.f32 %v612_v42, %v1716_v41  ;;  %v614_v44 = vpop.f32.mrb[7].mxu0  ;;  %v1391_v46 = vpop.eup %1390 }
 0x19a   : > { %v615_v45 = vadd.f32 %v614_v44, %v1716_v41  ;;  %v1393_v47 = vpop.eup %1392 }
 0x19b   : > { %1402 = vtanh.f32 %v613_v43 }
 0x19c   : > { %1404 = vtanh.f32 %v615_v45 }
 0x19d   : > { %v1395_v48 = vpop.eup %1394 }
 0x19e   : > { %v1397_v49 = vpop.eup %1396  ;;  %v1302_v50 = vpack.c.bf16 %v1395_v48, %v1391_v46 }
 0x19f   : > { %v1300_v51 = vpack.c.bf16 %v1397_v49, %v1393_v47 }
 0x1a1   : > { %1301 = vmatprep.subr.bf16.mxu1 %v1300_v51  ;;  %v1399_v35 = vpop.eup %1398  ;;  %v1803_v51 = vld [vmem:[%s1857_s7] sm:$0x1] }
 0x1a2   : > { %1303 = vmatpush1.bf16.msra.mxu1 %v1302_v50  ;;  %v1401_v55 = vpop.eup %1400 }
 0x1a5   : > { %v1403_v52 = vpop.eup %1402 }
 0x1a6   : > { %v1405_v53 = vpop.eup %1404  ;;  %v1306_v58 = vpack.c.bf16 %v1403_v52, %v1399_v35 }
 0x1a7   : > { %v1304_v59 = vpack.c.bf16 %v1405_v53, %v1401_v55 }
 0x1a9   : > { %1305 = vmatprep.subr.bf16.mxu1 %v1304_v59 }
 0x1aa   : > { %1307 = vmatpush1.bf16.msra.mxu1 %v1306_v58 }
 0x1ab   : > { %1317 = vmatprep.subr.bf16.mxu1 %v1316_v10 }
 0x1ad   : > { %1276 = vmatmul.mubr.msk.f32.vlgmr.msra.gmra.mrb[0].mxu1 %vm515_vm0, %v1723_v60 }
 0x1ae   : > { %1319 = vmatpush1.bf16.msra.mxu1 %v1318_v7  ;;  %727 = vmatprep.mubr.f32.mxu1 %v1464_v33 }
 0x1af   : > { %1321 = vmatprep.subr.bf16.mxu1 %v1320_v23 }
 0x1b1   : > { %1277 = vmatmul.mubr.msk.f32.gmra.mrb[2].mxu1 %vm515_vm0, %v1737_v61 }
 0x1b2   : > { %1323 = vmatpush1.bf16.msra.mxu1 %v1322_v22  ;;  %733 = vmatprep.mubr.f32.mxu1 %v1464_v33 }
 0x1b5   : > { %1278 = vmatmul.mubr.msk.f32.gmra.mrb[4].mxu1 %vm515_vm0, %v1751_v54 }
 0x1b6   : > { %739 = vmatprep.mubr.f32.mxu1 %v1464_v33 }
 0x1b9   : > { %1279 = vmatmul.mubr.msk.f32.gmra.mrb[6].mxu1 %vm515_vm0, %v1759_v62 }
 0x1ba   : > { %994 = vmatprep.mubr.f32.mxu1 %v1464_v33 }
 0x1bd   : > { %1281 = vmatmul.mubr.msk.f32.vlgmr.msra.gmra.mrb[8].mxu1 %vm515_vm0, %v1675_v24 }
 0x1be   : > { %1000 = vmatprep.mubr.f32.mxu1 %v1464_v33 }
 0x1c1   : > { %1282 = vmatmul.mubr.msk.f32.gmra.mrb[10].mxu1 %vm515_vm0, %v1683_v25 }
 0x1c2   : > { %1006 = vmatprep.mubr.f32.mxu1 %v1464_v33 }
 0x1c5   : > { %1283 = vmatmul.mubr.msk.f32.gmra.mrb[12].mxu1 %vm515_vm0, %v1691_v26 }
 0x1c6   : > { %1012 = vmatprep.mubr.f32.mxu1 %v1464_v33 }
 0x1c9   : > { %1284 = vmatmul.mubr.msk.f32.gmra.mrb[14].mxu1 %vm515_vm0, %v1699_v27 }
 0x1ca   : > { %1188 = vmatprep.mubr.f32.mxu1 %v1464_v33 }
 0x280   : > { %v723_v57 = vpop.f32.mrb[0].mxu1 }
 0x281   : > { %v724_v63 = vadd.f32 %v723_v57, %v1776_v56  ;;  %v725_v0 = vpop.f32.mrb[1].mxu1 }
 0x282   : > { %v726_v1 = vadd.f32 %v725_v0, %v1776_v56 }
 0x283   : > { %1406 = vtanh.f32 %v724_v63 }
 0x284   : > { %v729_v5 = vpop.f32.mrb[2].mxu1  ;;  %1408 = vtanh.f32 %v726_v1 }
 0x285   : > { %v730_v7 = vadd.f32 %v729_v5, %v1780_v3  ;;  %v731_v9 = vpop.f32.mrb[3].mxu1  ;;  %v1465_v5 = vmov 1966171168  }
 0x286   : > { %v732_v10 = vadd.f32 %v731_v9, %v1780_v3 }
 0x287   : > { %1410 = vtanh.f32 %v730_v7  ;;  %v833_v7 = vunpack.c.l.s4 %v1465_v5 }
 0x288   : > { %1412 = vtanh.f32 %v732_v10  ;;  %v735_v8 = vpop.f32.mrb[4].mxu1 }
 0x289   : > { %v736_v12 = vadd.f32 %v735_v8, %v1784_v11  ;;  %v737_v13 = vpop.f32.mrb[5].mxu1  ;;  %v834_v9 = vunpack.c.0.s8 %v833_v7 }
 0x28a   : > { %v738_v14 = vadd.f32 %v737_v13, %v1784_v11 }
 0x28b   : > { %1414 = vtanh.f32 %v736_v12  ;;  %v837_v13 = vsub.s32 %v834_v9, %v1534_v4 }
 0x28c   : > { %v741_v15 = vpop.f32.mrb[6].mxu1  ;;  %1416 = vtanh.f32 %v738_v14 }
 0x28d   : > { %v742_v16 = vadd.f32 %v741_v15, %v1788_v6  ;;  %v743_v21 = vpop.f32.mrb[7].mxu1  ;;  %v1407_v23 = vpop.eup %1406 }
 0x28e   : > { %v744_v22 = vadd.f32 %v743_v21, %v1788_v6  ;;  %v1409_v24 = vpop.eup %1408 }
 0x28f   : > { %1418 = vtanh.f32 %v742_v16 }
 0x290   : > { %1420 = vtanh.f32 %v744_v22  ;;  %v996_v25 = vpop.f32.mrb[8].mxu1 }
 0x291   : > { %v1411_v26 = vpop.eup %1410  ;;  %v997_v27 = vadd.f32 %v996_v25, %v1704_v28  ;;  %v998_v29 = vpop.f32.mrb[9].mxu1 }
 0x292   : > { %v1413_v30 = vpop.eup %1412  ;;  %v999_v19 = vadd.f32 %v998_v29, %v1704_v28  ;;  %v1310_v31 = vpack.c.bf16 %v1411_v26, %v1407_v23 }
 0x293   : > { %v1308_v32 = vpack.c.bf16 %v1413_v30, %v1409_v24  ;;  %1422 = vtanh.f32 %v997_v27 }
 0x294   : > { %v1002_v34 = vpop.f32.mrb[10].mxu1  ;;  %1424 = vtanh.f32 %v999_v19 }
 0x295   : > { %v1003_v36 = vadd.f32 %v1002_v34, %v1708_v20  ;;  %1309 = vmatprep.subr.bf16.mxu0 %v1308_v32  ;;  %v1004_v17 = vpop.f32.mrb[11].mxu1  ;;  %v1415_v38 = vpop.eup %1414 }
 0x296   : > { %v1005_v37 = vadd.f32 %v1004_v17, %v1708_v20  ;;  %1311 = vmatpush1.bf16.msra.mxu0 %v1310_v31  ;;  %v1417_v39 = vpop.eup %1416 }
 0x297   : > { %1426 = vtanh.f32 %v1003_v36 }
 0x298   : > { %1428 = vtanh.f32 %v1005_v37  ;;  %v1008_v40 = vpop.f32.mrb[12].mxu1 }
 0x299   : > { %v1419_v42 = vpop.eup %1418  ;;  %v1009_v28 = vadd.f32 %v1008_v40, %v1712_v18  ;;  %v1010_v43 = vpop.f32.mrb[13].mxu1 }
 0x29a   : > { %v1421_v44 = vpop.eup %1420  ;;  %v1011_v45 = vadd.f32 %v1010_v43, %v1712_v18  ;;  %v1314_v46 = vpack.c.bf16 %v1419_v42, %v1415_v38 }
 0x29b   : > { %v1312_v47 = vpack.c.bf16 %v1421_v44, %v1417_v39  ;;  %1430 = vtanh.f32 %v1009_v28 }
 0x29c   : > { %v1014_v48 = vpop.f32.mrb[14].mxu1  ;;  %1432 = vtanh.f32 %v1011_v45 }
 0x29d   : > { %v1015_v49 = vadd.f32 %v1014_v48, %v1716_v41  ;;  %1313 = vmatprep.subr.bf16.mxu0 %v1312_v47  ;;  %v1016_v20 = vpop.f32.mrb[15].mxu1  ;;  %v1423_v35 = vpop.eup %1422 }
 0x29e   : > { %v1017_v50 = vadd.f32 %v1016_v20, %v1716_v41  ;;  %1315 = vmatpush1.bf16.msra.mxu0 %v1314_v46  ;;  %v1425_v18 = vpop.eup %1424 }
 0x29f   : > { %1434 = vtanh.f32 %v1015_v49 }
 0x2a0   : > { %1436 = vtanh.f32 %v1017_v50 }
 0x2a1   : > { %v1427_v55 = vpop.eup %1426  ;;  %1280 = vmatmul.mubr.msk.f32.vlgmr.msra.gmra.mrb[8].mxu0 %vm515_vm0, %v1803_v51 }
 0x2a2   : > { %v1429_v52 = vpop.eup %1428  ;;  %v1326_v53 = vpack.c.bf16 %v1427_v55, %v1423_v35  ;;  %1091 = vmatprep.mubr.f32.mxu0 %v1464_v33 }
 0x2a3   : > { %v1324_v58 = vpack.c.bf16 %v1429_v52, %v1425_v18 }
 0x2a5   : > { %1325 = vmatprep.subr.bf16.mxu0 %v1324_v58  ;;  %v1431_v41 = vpop.eup %1430 }
 0x2a6   : > { %1327 = vmatpush1.bf16.msra.mxu0 %v1326_v53  ;;  %v1433_v59 = vpop.eup %1432 }
 0x2a9   : > { %v1435_v57 = vpop.eup %1434 }
 0x2aa   : > { %v1437_v63 = vpop.eup %1436  ;;  %v1330_v0 = vpack.c.bf16 %v1435_v57, %v1431_v41 }
 0x2ab   : > { %v1328_v1 = vpack.c.bf16 %v1437_v63, %v1433_v59 }
 0x2ad   : > { %1329 = vmatprep.subr.bf16.mxu0 %v1328_v1 }
 0x2ae   : > { %1331 = vmatpush1.bf16.msra.mxu0 %v1330_v0 }
 0x2b1   : > { %1285 = vmatmul.mubr.msk.f32.vlgmr.msra.gmra.mrb[10].mxu0 %vm515_vm0, %v1723_v60  ;;  %v754_v60 = vstv %s351_s28 }
 0x2b2   : > { %1097 = vmatprep.mubr.f32.mxu0 %v1464_v33 }
 0x2b5   : > { %1286 = vmatmul.mubr.msk.f32.gmra.mrb[12].mxu0 %vm515_vm0, %v1737_v61 }
 0x2b6   : > { %1103 = vmatprep.mubr.f32.mxu0 %v1464_v33 }
 0x2b9   : > { %1287 = vmatmul.mubr.msk.f32.gmra.mrb[14].mxu0 %vm515_vm0, %v1751_v54 }
 0x2ba   : > { %1109 = vmatprep.mubr.f32.mxu0 %v1464_v33 }
 0x2bd   : > { %1288 = vmatmul.mubr.msk.f32.gmra.mrb[16].mxu0 %vm515_vm0, %v1759_v62 }
 0x374   : > { %v824_v10 = vpop.f32.mrb[8].mxu0 }
 0x375   : > { %v825_v8 = vadd.f32 %v824_v10, %v754_v60  ;;  %v826_v12 = vpop.f32.mrb[9].mxu0 }
 0x376   : > { %v827_v61 = vadd.f32 %v826_v12, %v754_v60 }
 0x378   : > { %v831_v14 = vcombine.low %v825_v8, %v827_v61 }
 0x37a   : > { %v838_v15 = vrot.slane %v831_v14, %v837_v13 }
 0x37c   : > { %v845_v54 = vrot.slane %v838_v15, %v837_v13 }
 0x37e   : > { %851 = vst.msk [vmem:[%s1824_s30] sm:$0x3] %vm1827_vm1, %v845_v54 }
 0x384   : > { %v1093_v62 = vpop.f32.mrb[10].mxu0 }
 0x385   : > { %v1094_v4 = vadd.f32 %v1093_v62, %v1776_v56  ;;  %v1095_v16 = vpop.f32.mrb[11].mxu0 }
 0x386   : > { %v1096_v21 = vadd.f32 %v1095_v16, %v1776_v56 }
 0x387   : > { %1438 = vtanh.f32 %v1094_v4 }
 0x388   : > { %v1099_v22 = vpop.f32.mrb[12].mxu0  ;;  %1440 = vtanh.f32 %v1096_v21 }
 0x389   : > { %v1100_v23 = vadd.f32 %v1099_v22, %v1780_v3  ;;  %v1101_v24 = vpop.f32.mrb[13].mxu0 }
 0x38a   : > { %v1102_v2 = vadd.f32 %v1101_v24, %v1780_v3 }
 0x38b   : > { %1442 = vtanh.f32 %v1100_v23 }
 0x38c   : > { %1444 = vtanh.f32 %v1102_v2  ;;  %v1105_v25 = vpop.f32.mrb[14].mxu0 }
 0x38d   : > { %v1106_v26 = vadd.f32 %v1105_v25, %v1784_v11  ;;  %v1107_v27 = vpop.f32.mrb[15].mxu0 }
 0x38e   : > { %v1108_v29 = vadd.f32 %v1107_v27, %v1784_v11 }
 0x38f   : > { %1446 = vtanh.f32 %v1106_v26 }
 0x390   : > { %v1111_v30 = vpop.f32.mrb[16].mxu0  ;;  %1448 = vtanh.f32 %v1108_v29 }
 0x391   : > { %v1112_v56 = vadd.f32 %v1111_v30, %v1788_v6  ;;  %v1113_v19 = vpop.f32.mrb[17].mxu0  ;;  %v1439_v32 = vpop.eup %1438 }
 0x392   : > { %v1114_v31 = vadd.f32 %v1113_v19, %v1788_v6  ;;  %v1441_v34 = vpop.eup %1440 }
 0x393   : > { %1450 = vtanh.f32 %v1112_v56 }
 0x394   : > { %1452 = vtanh.f32 %v1114_v31 }
 0x395   : > { %v1443_v3 = vpop.eup %1442 }
 0x396   : > { %v1445_v36 = vpop.eup %1444  ;;  %v1334_v17 = vpack.c.bf16 %v1443_v3, %v1439_v32 }
 0x397   : > { %v1332_v37 = vpack.c.bf16 %v1445_v36, %v1441_v34 }
 0x399   : > { %1333 = vmatprep.subr.bf16.mxu1 %v1332_v37  ;;  %v1447_v38 = vpop.eup %1446 }
 0x39a   : > { %1335 = vmatpush1.bf16.msra.mxu1 %v1334_v17  ;;  %v1449_v11 = vpop.eup %1448 }
 0x39d   : > { %v1451_v39 = vpop.eup %1450 }
 0x39e   : > { %v1453_v40 = vpop.eup %1452  ;;  %v1338_v42 = vpack.c.bf16 %v1451_v39, %v1447_v38 }
 0x39f   : > { %v1336_v28 = vpack.c.bf16 %v1453_v40, %v1449_v11 }
 0x3a1   : > { %1337 = vmatprep.subr.bf16.mxu1 %v1336_v28 }
 0x3a2   : > { %1339 = vmatpush1.bf16.msra.mxu1 %v1338_v42 }
 0x3a5   : > { %1289 = vmatmul.mubr.msk.f32.vlgmr.msra.gmra.mrb[16].mxu1 %vm515_vm0, %v1803_v51 }
 0x478   : > { %v1190_v6 = vpop.f32.mrb[16].mxu1 }
 0x479   : > { %v1191_v43 = vadd.f32 %v1190_v6, %v754_v60  ;;  %v1192_v44 = vpop.f32.mrb[17].mxu1 }
 0x47a   : > { %v1193_v45 = vadd.f32 %v1192_v44, %v754_v60 }
 0x47c   : > { %v1197_v46 = vcombine.low %v1191_v43, %v1193_v45 }
 0x47e   : > { %v1204_v47 = vrot.slane %v1197_v46, %v837_v13 }
 0x480   : > { %v1211_v48 = vrot.slane %v1204_v47, %v837_v13 }
 0x482   : > { %1213 = vst.msk [vmem:[%s1824_s30 + $0x2] sm:$0x3] %vm1827_vm1, %v1211_v48 }
 0x483 PF: > { %s20_s11 = sadd.s32 1, %s1460_s11  }
 0x484   : > { %p17_p4 = scmp.ge.s32.totalorder %s20_s11, 4  }
 0x486   :  { %19 = sbr.rel (!%p17_p4) target bundleno = 2 (0x2), region = 86 }

</bundles_post_ra>
